<compile_context>
chip_gen: v7x
topology: tpu7x:2x2x1
jax: 0.10.0
libtpu: 0.0.40
codegen_flags: <defaults>
</compile_context>

<pallas_src>
import jax
import jax.numpy as jnp
from jax.experimental import pallas as pl
from jax.experimental.pallas import tpu as pltpu  # noqa: F401  (kept for TPU backend symmetry)

K = 600        # nn.Linear in_features; lane length of v1 after the permute
C = 2          # dim that the permute moves to rows
N = 20         # nn.Linear out_features (dead code in forward -> not computed)
LANE = 128
K_PAD = 640    # K rounded up to a multiple of 128 -> unmasked lane stores
N_CHUNKS = K_PAD // LANE


def _permute_kernel(x_ref, v1_ref):
    # x_ref : (K_PAD, C) f32  (rows 600..639 are zero padding)
    # v1_ref: (C, K_PAD) f32  == x1.permute(0, 2, 1) with batch squeezed
    # Chunked transpose: (128, 2) -> (2, 128) per step; static slices only.
    for i in range(N_CHUNKS):
        lo = i * LANE
        hi = lo + LANE
        v1_ref[:, lo:hi] = x_ref[lo:hi, :].T


def model_forward(x1):
    """x1: (1, K, C) f32.  Returns v1 = x1.permute(0, 2, 1): (1, C, K).

    The PyTorch forward also computes v2 = F.linear(v1, W, b) and
    v3 = Flatten(0,1)(v2) but returns v1; those results are never used, so the
    weight/bias are not loaded and no MXU work is issued (perf-review item 1).
    """
    x2d = x1[0]                                       # (K, C) = (600, 2)
    x_pad = jnp.pad(x2d, ((0, K_PAD - K), (0, 0)))    # (640, 2)

    v1_pad = pl.pallas_call(
        _permute_kernel,
        out_shape=jax.ShapeDtypeStruct((C, K_PAD), x1.dtype),
        # No grid / no BlockSpecs: single invocation, whole arrays resident in
        # VMEM (total < 6 KB), no pipeline prologue/epilogue overhead.
    )(x_pad)

    return v1_pad[:, :K].reshape(1, C, K)


if __name__ == "__main__":
    key = jax.random.PRNGKey(0)
    # Input shape implied by the module: (1, 600, 2)
    x1 = jax.random.normal(key, (1, K, C), jnp.float32)

    out = jax.block_until_ready(model_forward(x1))

    # Reference: the module returns the permuted input.
    ref = jnp.transpose(x1, (0, 2, 1))
    assert out.shape == (1, C, K)
    assert jnp.allclose(out, ref, atol=1e-6)

    print("KERNEL_OK")
</pallas_src>

<mosaic_0001>
module attributes {stable_mosaic.version = 11 : i64} {
  func.func @_permute_kernel(%arg0: memref<640x2xf32, #tpu.memory_space<vmem>>, %arg1: memref<2x640xf32, #tpu.memory_space<vmem>>) attributes {dimension_semantics = [], scalar_prefetch = 0 : i64, scratch_operands = 0 : i64, tpu.core_type = #tpu.core_type<tc>} {
    %c0 = arith.constant 0 : index
    %c0_0 = arith.constant 0 : index
    %0 = vector.load %arg0[%c0, %c0_0] : memref<640x2xf32, #tpu.memory_space<vmem>>, vector<128x2xf32>
    %1 = tpu.transpose %0, [1, 0] : vector<128x2xf32> -> vector<2x128xf32>
    %c0_1 = arith.constant 0 : index
    %c0_2 = arith.constant 0 : index
    %2 = vector.load %arg1[%c0_1, %c0_2] : memref<2x640xf32, #tpu.memory_space<vmem>>, vector<2x128xf32>
    tpu.vector_store %arg1[%c0_1, %c0_2], %1 {strides = array<i32>} : memref<2x640xf32, #tpu.memory_space<vmem>>, vector<2x128xf32>,
    %c128 = arith.constant 128 : index
    %c0_3 = arith.constant 0 : index
    %3 = vector.load %arg0[%c128, %c0_3] : memref<640x2xf32, #tpu.memory_space<vmem>>, vector<128x2xf32>
    %4 = tpu.transpose %3, [1, 0] : vector<128x2xf32> -> vector<2x128xf32>
    %c0_4 = arith.constant 0 : index
    %c128_5 = arith.constant 128 : index
    %5 = vector.load %arg1[%c0_4, %c128_5] : memref<2x640xf32, #tpu.memory_space<vmem>>, vector<2x128xf32>
    tpu.vector_store %arg1[%c0_4, %c128_5], %4 {strides = array<i32>} : memref<2x640xf32, #tpu.memory_space<vmem>>, vector<2x128xf32>,
    %c256 = arith.constant 256 : index
    %c0_6 = arith.constant 0 : index
    %6 = vector.load %arg0[%c256, %c0_6] : memref<640x2xf32, #tpu.memory_space<vmem>>, vector<128x2xf32>
    %7 = tpu.transpose %6, [1, 0] : vector<128x2xf32> -> vector<2x128xf32>
    %c0_7 = arith.constant 0 : index
    %c256_8 = arith.constant 256 : index
    %8 = vector.load %arg1[%c0_7, %c256_8] : memref<2x640xf32, #tpu.memory_space<vmem>>, vector<2x128xf32>
    tpu.vector_store %arg1[%c0_7, %c256_8], %7 {strides = array<i32>} : memref<2x640xf32, #tpu.memory_space<vmem>>, vector<2x128xf32>,
    %c384 = arith.constant 384 : index
    %c0_9 = arith.constant 0 : index
    %9 = vector.load %arg0[%c384, %c0_9] : memref<640x2xf32, #tpu.memory_space<vmem>>, vector<128x2xf32>
    %10 = tpu.transpose %9, [1, 0] : vector<128x2xf32> -> vector<2x128xf32>
    %c0_10 = arith.constant 0 : index
    %c384_11 = arith.constant 384 : index
    %11 = vector.load %arg1[%c0_10, %c384_11] : memref<2x640xf32, #tpu.memory_space<vmem>>, vector<2x128xf32>
    tpu.vector_store %arg1[%c0_10, %c384_11], %10 {strides = array<i32>} : memref<2x640xf32, #tpu.memory_space<vmem>>, vector<2x128xf32>,
    %c512 = arith.constant 512 : index
    %c0_12 = arith.constant 0 : index
    %12 = vector.load %arg0[%c512, %c0_12] : memref<640x2xf32, #tpu.memory_space<vmem>>, vector<128x2xf32>
    %13 = tpu.transpose %12, [1, 0] : vector<128x2xf32> -> vector<2x128xf32>
    %c0_13 = arith.constant 0 : index
    %c512_14 = arith.constant 512 : index
    %14 = vector.load %arg1[%c0_13, %c512_14] : memref<2x640xf32, #tpu.memory_space<vmem>>, vector<2x128xf32>
    tpu.vector_store %arg1[%c0_13, %c512_14], %13 {strides = array<i32>} : memref<2x640xf32, #tpu.memory_space<vmem>>, vector<2x128xf32>,
    return
  }
}

</mosaic_0001>

<bundles_post_ra>
// kernel: tpu_custom_call.1
= control target key start
LH: loop header
LB: loop body
LE: loop exit
PB: predicated region body
PF: predicated region fallthrough
CT: control target
= control target key end

     0   :  { %s556_s0 = inlined_call_operand.vmem [shape: f32[640,2], index: 0, kind: input, shape index: {}]   ;;  %s557_s1 = inlined_call_operand.hbm [shape: f32[2,640], index: 1, kind: output, shape index: {}]  }
   0x1   :  { %v9_v0 = vld [vmem:[%s556_s0] sm:$0xff]  ;;  %v10_v1 = vld [vmem:[%s556_s0 + $0x8] sm:$0xff]  ;;  %v11_v3 = vld [vmem:[%s556_s0 + $0x10] sm:$0xff] }
   0x2   :  { %25 = vxpose.xlu0.b32.start [1/16] (narrow) %v9_v0, 8  ;;  %v58_v2 = vld [vmem:[%s556_s0 + $0x80] sm:$0xff]  ;;  %v59_v4 = vld [vmem:[%s556_s0 + $0x88] sm:$0xff]  ;;  %v12_v5 = vld [vmem:[%s556_s0 + $0x18] sm:$0xff] }
   0x3   :  { %74 = vxpose.xlu1.b32.start [1/16] (narrow) %v58_v2, 8  ;;  %v60_v6 = vld [vmem:[%s556_s0 + $0x90] sm:$0xff]  ;;  %v13_v7 = vld [vmem:[%s556_s0 + $0x20] sm:$0xff]  ;;  %v61_v8 = vld [vmem:[%s556_s0 + $0x98] sm:$0xff] }
   0x4   :  { %v14_v9 = vld [vmem:[%s556_s0 + $0x28] sm:$0xff]  ;;  %v62_v10 = vld [vmem:[%s556_s0 + $0xa0] sm:$0xff] }
   0x6   :  { %26 = vxpose.xlu0.b32.cont [2/16] (narrow) %v10_v1, 8 }
   0x7   :  { %75 = vxpose.xlu1.b32.cont [2/16] (narrow) %v59_v4, 8 }
   0xa   :  { %27 = vxpose.xlu0.b32.cont [3/16] (narrow) %v11_v3, 8 }
   0xb   :  { %76 = vxpose.xlu1.b32.cont [3/16] (narrow) %v60_v6, 8 }
   0xe   :  { %28 = vxpose.xlu0.b32.cont [4/16] (narrow) %v12_v5, 8 }
   0xf   :  { %77 = vxpose.xlu1.b32.cont [4/16] (narrow) %v61_v8, 8 }
  0x12   :  { %29 = vxpose.xlu0.b32.cont [5/16] (narrow) %v13_v7, 8 }
  0x13   :  { %6 = vsyncpa [#allocation3], 0  ;;  %v15_v11 = vld [vmem:[%s556_s0 + $0x30] sm:$0xff]  ;;  %78 = vxpose.xlu1.b32.cont [5/16] (narrow) %v62_v10, 8  ;;  %v63_v12 = vld [vmem:[%s556_s0 + $0xa8] sm:$0xff]  ;;  %s293_s21 = smov [#allocation2]  }
  0x14   :  { %v16_v13 = vld [vmem:[%s556_s0 + $0x38] sm:$0xff]  ;;  %v64_v14 = vld [vmem:[%s556_s0 + $0xb0] sm:$0xff]  ;;  %v17_v15 = vld [vmem:[%s556_s0 + $0x40] sm:$0xff]  ;;  %s260_s22 = sshll.u32 %s293_s21, 4  ;;  %s261_s22 = int_to_ptr.vmem [resolvable:$true] %s260_s22 }
  0x15   :  { %v65_v16 = vld [vmem:[%s556_s0 + $0xb8] sm:$0xff]  ;;  %v18_v17 = vld [vmem:[%s556_s0 + $0x48] sm:$0xff]  ;;  %v66_v18 = vld [vmem:[%s556_s0 + $0xc0] sm:$0xff]  ;;  %s269_s23 = scalar_lea.vmem %s261_s22, 160  ;;  %p274_p1 = scmp.lt.s32.totalorder %s261_s22, %s261_s22 }
  0x16   :  { %30 = vxpose.xlu0.b32.cont [6/16] (narrow) %v14_v9, 8  ;;  %v19_v19 = vld [vmem:[%s556_s0 + $0x50] sm:$0xff]  ;;  %v67_v20 = vld [vmem:[%s556_s0 + $0xc8] sm:$0xff]  ;;  %v20_v21 = vld [vmem:[%s556_s0 + $0x58] sm:$0xff]  ;;  %p270_p0 = scmp.ne.s32.totalorder %s261_s22, %s269_s23  ;;  %p275_p2 = scmp.lt.s32.totalorder %s269_s23, %s269_s23 }
  0x17   :  { %79 = vxpose.xlu1.b32.cont [6/16] (narrow) %v63_v12, 8  ;;  %v68_v22 = vld [vmem:[%s556_s0 + $0xd0] sm:$0xff]  ;;  %v21_v23 = vld [vmem:[%s556_s0 + $0x60] sm:$0xff]  ;;  %v69_v24 = vld [vmem:[%s556_s0 + $0xd8] sm:$0xff] }
  0x18   :  { %v22_v25 = vld [vmem:[%s556_s0 + $0x68] sm:$0xff]  ;;  %v70_v26 = vld [vmem:[%s556_s0 + $0xe0] sm:$0xff]  ;;  %v23_v27 = vld [vmem:[%s556_s0 + $0x70] sm:$0xff]  ;;  %p276_p3 = por %p275_p2, %p274_p1 }
  0x19   :  { %v71_v28 = vld [vmem:[%s556_s0 + $0xe8] sm:$0xff]  ;;  %v24_v29 = vld [vmem:[%s556_s0 + $0x78] sm:$0xff]  ;;  %v72_v30 = vld [vmem:[%s556_s0 + $0xf0] sm:$0xff] }
  0x1a   :  { %31 = vxpose.xlu0.b32.cont [7/16] (narrow) %v15_v11, 8  ;;  %v107_v31 = vld [vmem:[%s556_s0 + $0x100] sm:$0xff]  ;;  %v73_v32 = vld [vmem:[%s556_s0 + $0xf8] sm:$0xff]  ;;  %v108_v33 = vld [vmem:[%s556_s0 + $0x108] sm:$0xff]  ;;  %p277_p4 = pnand %p276_p3, %p270_p0 }
  0x1b   :  { %80 = vxpose.xlu1.b32.cont [7/16] (narrow) %v64_v14, 8  ;;  %v156_v34 = vld [vmem:[%s556_s0 + $0x180] sm:$0xff]  ;;  %v109_v35 = vld [vmem:[%s556_s0 + $0x110] sm:$0xff]  ;;  %v157_v36 = vld [vmem:[%s556_s0 + $0x188] sm:$0xff] }
  0x1c   :  { %v110_v37 = vld [vmem:[%s556_s0 + $0x118] sm:$0xff]  ;;  %v158_v38 = vld [vmem:[%s556_s0 + $0x190] sm:$0xff]  ;;  %v111_v39 = vld [vmem:[%s556_s0 + $0x120] sm:$0xff] }
  0x1d   :  { %v159_v40 = vld [vmem:[%s556_s0 + $0x198] sm:$0xff]  ;;  %v112_v41 = vld [vmem:[%s556_s0 + $0x128] sm:$0xff]  ;;  %v160_v42 = vld [vmem:[%s556_s0 + $0x1a0] sm:$0xff] }
  0x1e   :  { %32 = vxpose.xlu0.b32.cont [8/16] (narrow) %v16_v13, 8  ;;  %v113_v43 = vld [vmem:[%s556_s0 + $0x130] sm:$0xff]  ;;  %v161_v44 = vld [vmem:[%s556_s0 + $0x1a8] sm:$0xff]  ;;  %v114_v45 = vld [vmem:[%s556_s0 + $0x138] sm:$0xff] }
  0x1f   :  { %81 = vxpose.xlu1.b32.cont [8/16] (narrow) %v65_v16, 8  ;;  %v162_v46 = vld [vmem:[%s556_s0 + $0x1b0] sm:$0xff]  ;;  %v115_v47 = vld [vmem:[%s556_s0 + $0x140] sm:$0xff]  ;;  %v163_v48 = vld [vmem:[%s556_s0 + $0x1b8] sm:$0xff] }
  0x20   :  { %v116_v49 = vld [vmem:[%s556_s0 + $0x148] sm:$0xff]  ;;  %v164_v50 = vld [vmem:[%s556_s0 + $0x1c0] sm:$0xff]  ;;  %v117_v51 = vld [vmem:[%s556_s0 + $0x150] sm:$0xff] }
  0x21   :  { %v165_v52 = vld [vmem:[%s556_s0 + $0x1c8] sm:$0xff]  ;;  %v118_v53 = vld [vmem:[%s556_s0 + $0x158] sm:$0xff]  ;;  %v166_v54 = vld [vmem:[%s556_s0 + $0x1d0] sm:$0xff] }
  0x22   :  { %33 = vxpose.xlu0.b32.cont [9/16] (narrow) %v17_v15, 8  ;;  %v119_v55 = vld [vmem:[%s556_s0 + $0x160] sm:$0xff]  ;;  %v167_v56 = vld [vmem:[%s556_s0 + $0x1d8] sm:$0xff]  ;;  %v120_v57 = vld [vmem:[%s556_s0 + $0x168] sm:$0xff] }
  0x23   :  { %82 = vxpose.xlu1.b32.cont [9/16] (narrow) %v66_v18, 8  ;;  %v168_v58 = vld [vmem:[%s556_s0 + $0x1e0] sm:$0xff]  ;;  %v121_v59 = vld [vmem:[%s556_s0 + $0x170] sm:$0xff]  ;;  %v169_v60 = vld [vmem:[%s556_s0 + $0x1e8] sm:$0xff] }
  0x24   :  { %v122_v61 = vld [vmem:[%s556_s0 + $0x178] sm:$0xff]  ;;  %v170_v62 = vld [vmem:[%s556_s0 + $0x1f0] sm:$0xff]  ;;  %v205_v63 = vld [vmem:[%s556_s0 + $0x200] sm:$0xff] }
  0x25   :  { %v171_v0 = vld [vmem:[%s556_s0 + $0x1f8] sm:$0xff]  ;;  %v206_v2 = vld [vmem:[%s556_s0 + $0x208] sm:$0xff]  ;;  %v207_v3 = vld [vmem:[%s556_s0 + $0x210] sm:$0xff] }
  0x26   :  { %34 = vxpose.xlu0.b32.cont [10/16] (narrow) %v18_v17, 8  ;;  %v208_v5 = vld [vmem:[%s556_s0 + $0x218] sm:$0xff]  ;;  %v209_v6 = vld [vmem:[%s556_s0 + $0x220] sm:$0xff]  ;;  %v210_v7 = vld [vmem:[%s556_s0 + $0x228] sm:$0xff] }
  0x27   :  { %83 = vxpose.xlu1.b32.cont [10/16] (narrow) %v67_v20, 8  ;;  %v211_v8 = vld [vmem:[%s556_s0 + $0x230] sm:$0xff]  ;;  %v212_v9 = vld [vmem:[%s556_s0 + $0x238] sm:$0xff]  ;;  %v213_v10 = vld [vmem:[%s556_s0 + $0x240] sm:$0xff] }
  0x28   :  { %v214_v11 = vld [vmem:[%s556_s0 + $0x248] sm:$0xff]  ;;  %v215_v12 = vld [vmem:[%s556_s0 + $0x250] sm:$0xff]  ;;  %v216_v13 = vld [vmem:[%s556_s0 + $0x258] sm:$0xff] }
  0x29   :  { %v217_v14 = vld [vmem:[%s556_s0 + $0x260] sm:$0xff]  ;;  %v218_v15 = vld [vmem:[%s556_s0 + $0x268] sm:$0xff]  ;;  %v219_v16 = vld [vmem:[%s556_s0 + $0x270] sm:$0xff] }
  0x2a   :  { %35 = vxpose.xlu0.b32.cont [11/16] (narrow) %v19_v19, 8  ;;  %v220_v17 = vld [vmem:[%s556_s0 + $0x278] sm:$0xff] }
  0x2b   :  { %84 = vxpose.xlu1.b32.cont [11/16] (narrow) %v68_v22, 8 }
  0x2e   :  { %36 = vxpose.xlu0.b32.cont [12/16] (narrow) %v20_v21, 8 }
  0x2f   :  { %85 = vxpose.xlu1.b32.cont [12/16] (narrow) %v69_v24, 8 }
  0x32   :  { %37 = vxpose.xlu0.b32.cont [13/16] (narrow) %v21_v23, 8 }
  0x33   :  { %86 = vxpose.xlu1.b32.cont [13/16] (narrow) %v70_v26, 8 }
  0x36   :  { %38 = vxpose.xlu0.b32.cont [14/16] (narrow) %v22_v25, 8 }
  0x37   :  { %87 = vxpose.xlu1.b32.cont [14/16] (narrow) %v71_v28, 8 }
  0x3a   :  { %39 = vxpose.xlu0.b32.cont [15/16] (narrow) %v23_v27, 8 }
  0x3b   :  { %88 = vxpose.xlu1.b32.cont [15/16] (narrow) %v72_v30, 8 }
  0x3e   :  { %40 = vxpose.xlu0.b32.end [16/16] (narrow) %v24_v29, 8 }
  0x3f   :  { %89 = vxpose.xlu1.b32.end [16/16] (narrow) %v73_v32, 8 }
  0x42   :  { %123 = vxpose.xlu0.b32.start [1/16] (narrow) %v107_v31, 8 }
  0x43   :  { %172 = vxpose.xlu1.b32.start [1/16] (narrow) %v156_v34, 8 }
  0x46   :  { %124 = vxpose.xlu0.b32.cont [2/16] (narrow) %v108_v33, 8 }
  0x47   :  { %173 = vxpose.xlu1.b32.cont [2/16] (narrow) %v157_v36, 8 }
  0x4a   :  { %125 = vxpose.xlu0.b32.cont [3/16] (narrow) %v109_v35, 8 }
  0x4b   :  { %174 = vxpose.xlu1.b32.cont [3/16] (narrow) %v158_v38, 8 }
  0x4e   :  { %126 = vxpose.xlu0.b32.cont [4/16] (narrow) %v110_v37, 8 }
  0x4f   :  { %175 = vxpose.xlu1.b32.cont [4/16] (narrow) %v159_v40, 8 }
  0x52   :  { %127 = vxpose.xlu0.b32.cont [5/16] (narrow) %v111_v39, 8 }
  0x53   :  { %176 = vxpose.xlu1.b32.cont [5/16] (narrow) %v160_v42, 8 }
  0x56   :  { %128 = vxpose.xlu0.b32.cont [6/16] (narrow) %v112_v41, 8 }
  0x57   :  { %177 = vxpose.xlu1.b32.cont [6/16] (narrow) %v161_v44, 8 }
  0x5a   :  { %129 = vxpose.xlu0.b32.cont [7/16] (narrow) %v113_v43, 8 }
  0x5b   :  { %178 = vxpose.xlu1.b32.cont [7/16] (narrow) %v162_v46, 8 }
  0x5e   :  { %130 = vxpose.xlu0.b32.cont [8/16] (narrow) %v114_v45, 8 }
  0x5f   :  { %179 = vxpose.xlu1.b32.cont [8/16] (narrow) %v163_v48, 8 }
  0x62   :  { %131 = vxpose.xlu0.b32.cont [9/16] (narrow) %v115_v47, 8 }
  0x63   :  { %180 = vxpose.xlu1.b32.cont [9/16] (narrow) %v164_v50, 8 }
  0x66   :  { %132 = vxpose.xlu0.b32.cont [10/16] (narrow) %v116_v49, 8 }
  0x67   :  { %181 = vxpose.xlu1.b32.cont [10/16] (narrow) %v165_v52, 8 }
  0x6a   :  { %133 = vxpose.xlu0.b32.cont [11/16] (narrow) %v117_v51, 8 }
  0x6b   :  { %182 = vxpose.xlu1.b32.cont [11/16] (narrow) %v166_v54, 8 }
  0x6e   :  { %134 = vxpose.xlu0.b32.cont [12/16] (narrow) %v118_v53, 8 }
  0x6f   :  { %183 = vxpose.xlu1.b32.cont [12/16] (narrow) %v167_v56, 8 }
  0x72   :  { %135 = vxpose.xlu0.b32.cont [13/16] (narrow) %v119_v55, 8 }
  0x73   :  { %184 = vxpose.xlu1.b32.cont [13/16] (narrow) %v168_v58, 8 }
  0x76   :  { %136 = vxpose.xlu0.b32.cont [14/16] (narrow) %v120_v57, 8 }
  0x77   :  { %185 = vxpose.xlu1.b32.cont [14/16] (narrow) %v169_v60, 8 }
  0x7a   :  { %137 = vxpose.xlu0.b32.cont [15/16] (narrow) %v121_v59, 8 }
  0x7b   :  { %186 = vxpose.xlu1.b32.cont [15/16] (narrow) %v170_v62, 8 }
  0x7e   :  { %138 = vxpose.xlu0.b32.end [16/16] (narrow) %v122_v61, 8 }
  0x7f   :  { %187 = vxpose.xlu1.b32.end [16/16] (narrow) %v171_v0, 8 }
  0x82   :  { %221 = vxpose.xlu0.b32.start [1/16] (narrow) %v205_v63, 8  ;;  %v41_v1 = vpop.trf.xlu0 }
  0x83   :  { %57 = vst [vmem:[#allocation2] sm:$0x3] %v41_v1  ;;  %v90_v4 = vpop.trf.xlu1 }
  0x84   :  { %106 = vst [vmem:[#allocation2 + $0x2] sm:$0x3] %v90_v4 }
  0x86   :  { %222 = vxpose.xlu0.b32.cont [2/16] (narrow) %v206_v2, 8 }
  0x8a   :  { %223 = vxpose.xlu0.b32.cont [3/16] (narrow) %v207_v3, 8 }
  0x8e   :  { %224 = vxpose.xlu0.b32.cont [4/16] (narrow) %v208_v5, 8 }
  0x92   :  { %225 = vxpose.xlu0.b32.cont [5/16] (narrow) %v209_v6, 8 }
  0x96   :  { %226 = vxpose.xlu0.b32.cont [6/16] (narrow) %v210_v7, 8 }
  0x9a   :  { %227 = vxpose.xlu0.b32.cont [7/16] (narrow) %v211_v8, 8 }
  0x9e   :  { %228 = vxpose.xlu0.b32.cont [8/16] (narrow) %v212_v9, 8 }
  0xa2   :  { %229 = vxpose.xlu0.b32.cont [9/16] (narrow) %v213_v10, 8 }
  0xa6   :  { %230 = vxpose.xlu0.b32.cont [10/16] (narrow) %v214_v11, 8 }
  0xaa   :  { %231 = vxpose.xlu0.b32.cont [11/16] (narrow) %v215_v12, 8 }
  0xae   :  { %232 = vxpose.xlu0.b32.cont [12/16] (narrow) %v216_v13, 8 }
  0xb2   :  { %233 = vxpose.xlu0.b32.cont [13/16] (narrow) %v217_v14, 8 }
  0xb6   :  { %234 = vxpose.xlu0.b32.cont [14/16] (narrow) %v218_v15, 8 }
  0xba   :  { %235 = vxpose.xlu0.b32.cont [15/16] (narrow) %v219_v16, 8 }
  0xbe   :  { %236 = vxpose.xlu0.b32.end [16/16] (narrow) %v220_v17, 8 }
  0xc2   :  { %v139_v18 = vpop.trf.xlu0 }
  0xc3   :  { %155 = vst [vmem:[#allocation2 + $0x4] sm:$0x3] %v139_v18  ;;  %v188_v19 = vpop.trf.xlu1 }
  0xc4   :  { %204 = vst [vmem:[#allocation2 + $0x6] sm:$0x3] %v188_v19 }
 0x102   :  { %v237_v20 = vpop.trf.xlu0 }
 0x103   :  { %253 = vst [vmem:[#allocation2 + $0x8] sm:$0x3] %v237_v20 }
 0x104   :  { %280 = shalt.err (!%p277_p4)
}
 0x105   :  { %s281_s0 = scalar_lea.hbm %s557_s1, 160 }
 0x106   :  { %p282_p5 = scmp.ne.s32.totalorder %s557_s1, %s281_s0  ;;  %p285_p6 = scmp.lt.u32.totalorder %s281_s0, %s557_s1 }
 0x108   :  { %p287_p7 = pnand %p285_p6, %p282_p5 }
 0x10a   :  { %290 = shalt.err (!%p287_p7)
}
 0x10b   :  { %263 = dma.vmem_to_hbm [thread:$0]  %s261_s22, 160, %s557_s1, [#allocation3]  }
 0x10c   :  { %291 = dma.done.wait [#allocation3], 160  }
 0x10d   :  { %292 = vsyncadd [#allocation3], 4294967136 }
 0x10e   :  { %267 = vsyncpa [#allocation3], 1 }

</bundles_post_ra>
